<compile_context>
chip_gen: v5e
topology: v5e:2x2
jax: 0.10.0
libtpu: 0.0.40
codegen_flags: <defaults>
</compile_context>

<pallas_src>
import math
import functools

import jax
import jax.numpy as jnp
from jax.experimental import pallas as pl
from jax.experimental.pallas import tpu as pltpu


# bf16 MXU inputs (fp32 accumulation). Set to jnp.float32 for bit-closer parity
# with an fp32 reference at ~2-4x MXU cost.
MATMUL_DTYPE = jnp.bfloat16
# dtype of the Q/K/V / attention-output intermediates written to HBM.
ACT_DTYPE = jnp.bfloat16
# additive mask-bias dtype (-1e9 is representable; half the DMA of fp32).
BIAS_DTYPE = jnp.bfloat16


# ----------------------------------------------------------------------------
# Helpers
# ----------------------------------------------------------------------------
def _round_up(x, m):
    return ((x + m - 1) // m) * m


def _pad_seq(s):
    """Pad sequence lengths so score/bias tiles stay (8,128)-legal & dense."""
    return _round_up(s, 128) if s > 128 else _round_up(s, 8)


def _pick_tile(dim, candidates):
    """Largest candidate that evenly divides `dim`, else the full dim
    (a full-extent block is always legal)."""
    for c in candidates:
        if dim % c == 0:
            return c
    return dim


def _pick_head_block(H, dk):
    """Heads per grid step.  Legality in the (B, S, H*dk) layout: hc == H
    (block width == d_model, the full last dim) or hc*dk a multiple of 128."""
    legal = [hc for hc in range(1, H + 1)
             if H % hc == 0 and (hc == H or (hc * dk) % 128 == 0)]
    good = [hc for hc in legal if hc * dk <= 512 and hc <= 8]
    return max(good) if good else min(legal)


def _vmem_capacity_bytes():
    try:
        cap = getattr(pltpu.get_tpu_info(), "vmem_capacity_bytes", None)
        if cap:
            return int(cap)
    except Exception:
        pass
    return 64 << 20  # conservative fallback (v7x per-TensorCore)


def _vmem_limit(block_bytes, extra_bytes=0):
    """Scoped-VMEM limit: double-buffered pipeline blocks + scratch/temps +
    slack, capped per generation (128 MiB on v5e/v6e, 64 MiB/TC on v7x)."""
    need = 2 * sum(block_bytes) + extra_bytes + (4 << 20)
    ceiling = max(int(_vmem_capacity_bytes() * 0.6), 16 << 20)
    return int(min(max(need, 16 << 20), ceiling))


@functools.lru_cache(maxsize=1)
def _exp_dtype():
    """bf16 exponentials on chips with a bf16 EUP (v6e/v7x); fp32 on <= v5e."""
    try:
        kind = jax.devices()[0].device_kind.lower()
    except Exception:
        return jnp.float32
    if any(v in kind for v in ("v2", "v3", "v4", "v5")):
        return jnp.float32
    return jnp.bfloat16


# ----------------------------------------------------------------------------
# Linear (matmul + bias) kernel:  x (N, Din) @ w (Din, Dout) + b
# ----------------------------------------------------------------------------
def _linear_kernel(x_ref, w_ref, b_ref, o_ref, acc_ref, *, compute_dtype):
    @pl.when(pl.program_id(2) == 0)
    def _init():
        acc_ref[...] = jnp.zeros_like(acc_ref)

    acc_ref[...] += jnp.dot(
        x_ref[...].astype(compute_dtype),
        w_ref[...].astype(compute_dtype),
        preferred_element_type=jnp.float32,
    )

    @pl.when(pl.program_id(2) == pl.num_programs(2) - 1)
    def _store():
        o_ref[...] = (acc_ref[...] + b_ref[...]).astype(o_ref.dtype)


def pallas_linear(x2d, w, b, out_dtype):
    """x2d: (N, Din); w: (Din, Dout) pre-transposed/pre-cast; b: (Dout,) fp32."""
    N, Din = x2d.shape
    Dout = w.shape[1]
    tm = _pick_tile(N, (512, 256, 128))
    tn = _pick_tile(Dout, (512, 256, 128))
    tk = _pick_tile(Din, (1024, 512, 256, 128))
    grid = (N // tm, Dout // tn, Din // tk)

    xi, wi = x2d.dtype.itemsize, w.dtype.itemsize
    oi = jnp.dtype(out_dtype).itemsize
    blocks = [tm * tk * xi, tk * tn * wi, tn * 4, tm * tn * oi]
    cost = pl.CostEstimate(
        flops=2 * N * Dout * Din,
        transcendentals=0,
        bytes_accessed=N * Din * xi + Din * Dout * wi + N * Dout * oi + Dout * 4,
    )

    return pl.pallas_call(
        functools.partial(_linear_kernel, compute_dtype=MATMUL_DTYPE),
        out_shape=jax.ShapeDtypeStruct((N, Dout), out_dtype),
        grid=grid,
        in_specs=[
            pl.BlockSpec((tm, tk), lambda i, j, k: (i, k)),
            pl.BlockSpec((tk, tn), lambda i, j, k: (k, j)),
            pl.BlockSpec((1, tn), lambda i, j, k: (0, j)),
        ],
        out_specs=pl.BlockSpec((tm, tn), lambda i, j, k: (i, j)),
        scratch_shapes=[pltpu.VMEM((tm, tn), jnp.float32)],
        compiler_params=pltpu.CompilerParams(
            dimension_semantics=("parallel", "parallel", "arbitrary"),
            vmem_limit_bytes=_vmem_limit(blocks, tm * tn * 4),
        ),
        cost_estimate=cost,
    )(x2d, w, b.astype(jnp.float32).reshape(1, Dout))


# ----------------------------------------------------------------------------
# Flash-attention kernel (online softmax, additive bias, head-major layout)
# ----------------------------------------------------------------------------
def _flash_attn_kernel(*refs, hc, dk, has_bias, compute_dtype, exp_dtype):
    if has_bias:
        q_ref, k_ref, v_ref, bias_ref, o_ref, m_sc, l_sc, acc_sc = refs
    else:
        q_ref, k_ref, v_ref, o_ref, m_sc, l_sc, acc_sc = refs
        bias_ref = None

    ki = pl.program_id(3)

    @pl.when(ki == 0)
    def _init():
        m_sc[...] = jnp.full_like(m_sc, -jnp.inf)
        l_sc[...] = jnp.zeros_like(l_sc)
        acc_sc[...] = jnp.zeros_like(acc_sc)

    bias = bias_ref[0].astype(jnp.float32) if has_bias else None    # (tq, tk)

    # Heads unrolled: each per-head matmul is a plain 2-D MXU op on a static
    # lane slice of the (tq, hc*dk) block -- no transposes anywhere.
    for h in range(hc):
        d0 = h * dk
        qh = q_ref[0, :, d0:d0 + dk].astype(compute_dtype)           # (tq, dk)
        kh = k_ref[0, :, d0:d0 + dk].astype(compute_dtype)           # (tk, dk)
        # scale already folded into the Q projection weights.
        s = jax.lax.dot_general(qh, kh, (((1,), (1,)), ((), ())),
                                preferred_element_type=jnp.float32)  # (tq, tk)
        if has_bias:
            s = s + bias

        m_prev = m_sc[:, h:h + 1]                                    # (tq, 1)
        m_new = jnp.maximum(m_prev, jnp.max(s, axis=-1, keepdims=True))
        alpha = jnp.exp(m_prev - m_new)                              # fp32
        p = jnp.exp((s - m_new).astype(exp_dtype))                   # (tq, tk)
        l_sc[:, h:h + 1] = alpha * l_sc[:, h:h + 1] + \
            jnp.sum(p.astype(jnp.float32), axis=-1, keepdims=True)

        vh = v_ref[0, :, d0:d0 + dk].astype(compute_dtype)           # (tk, dk)
        pv = jax.lax.dot_general(p.astype(compute_dtype), vh,
                                 (((1,), (0,)), ((), ())),
                                 preferred_element_type=jnp.float32)  # (tq, dk)
        acc_sc[:, d0:d0 + dk] = alpha * acc_sc[:, d0:d0 + dk] + pv
        m_sc[:, h:h + 1] = m_new

    @pl.when(ki == pl.num_programs(3) - 1)
    def _store():
        for h in range(hc):
            d0 = h * dk
            # approx reciprocal (EUP): ~1e-3 rel error, covered by tolerance.
            inv = pl.reciprocal(l_sc[:, h:h + 1], approx=True)        # (tq, 1)
            o_ref[0, :, d0:d0 + dk] = (
                acc_sc[:, d0:d0 + dk] * inv).astype(o_ref.dtype)


def pallas_flash_attention(q, k, v, num_heads, d_k, mask=None):
    """q: (B,Sq,H*dk); k,v: (B,Sk,H*dk) head-major; mask: (B,Sq,Sk) or
    broadcastable (0 = masked).  Returns (B, Sq_padded, H*dk) in ACT_DTYPE."""
    B, Sq, D = q.shape
    Sk = k.shape[1]
    H, dk = num_heads, d_k

    Sq_p, Sk_p = _pad_seq(Sq), _pad_seq(Sk)
    need_bias = (mask is not None) or (Sk_p != Sk)

    if Sq_p != Sq:
        q = jnp.pad(q, ((0, 0), (0, Sq_p - Sq), (0, 0)))
    if Sk_p != Sk:
        k = jnp.pad(k, ((0, 0), (0, Sk_p - Sk), (0, 0)))
        v = jnp.pad(v, ((0, 0), (0, Sk_p - Sk), (0, 0)))

    bias = None
    if need_bias:
        if mask is not None:
            keep = jnp.broadcast_to(mask != 0, (B, Sq, Sk))
        else:
            keep = jnp.ones((B, Sq, Sk), jnp.bool_)
        keep = jnp.pad(keep, ((0, 0), (0, Sq_p - Sq), (0, Sk_p - Sk)),
                       constant_values=False)
        bias = jnp.where(keep, 0.0, -1e9).astype(BIAS_DTYPE)  # additive bias

    hc = _pick_head_block(H, dk)
    bw = hc * dk
    tq = _pick_tile(Sq_p, (256, 128))
    tk = _pick_tile(Sk_p, (512, 256, 128))
    grid = (B, H // hc, Sq_p // tq, Sk_p // tk)
    # TODO(synk): data-dependent skipping of fully-masked kv tiles (causal
    # fast path) not implemented for the generic runtime mask.

    in_specs = [
        pl.BlockSpec((1, tq, bw), lambda b, hg, qi, ki: (b, qi, hg)),
        pl.BlockSpec((1, tk, bw), lambda b, hg, qi, ki: (b, ki, hg)),
        pl.BlockSpec((1, tk, bw), lambda b, hg, qi, ki: (b, ki, hg)),
    ]
    args = [q, k, v]
    if need_bias:
        in_specs.append(
            pl.BlockSpec((1, tq, tk), lambda b, hg, qi, ki: (b, qi, ki)))
        args.append(bias)

    act = jnp.dtype(ACT_DTYPE).itemsize
    blocks = [tq * bw * act, tk * bw * act, tk * bw * act, tq * bw * act]
    if need_bias:
        blocks.append(tq * tk * jnp.dtype(BIAS_DTYPE).itemsize)
    # fp32 accumulators (lane-padded) + a few live (tq, tk) score/prob temps.
    extra = tq * bw * 4 + 2 * tq * 128 * 4 + 4 * tq * tk * 4

    cost = pl.CostEstimate(
        flops=4 * B * H * Sq_p * Sk_p * dk,
        transcendentals=B * H * Sq_p * Sk_p,
        bytes_accessed=(q.size + k.size + v.size) * act
        + (bias.size * jnp.dtype(BIAS_DTYPE).itemsize if need_bias else 0)
        + B * Sq_p * D * act,
    )

    kernel = functools.partial(
        _flash_attn_kernel, hc=hc, dk=dk, has_bias=need_bias,
        compute_dtype=MATMUL_DTYPE, exp_dtype=_exp_dtype())

    return pl.pallas_call(
        kernel,
        out_shape=jax.ShapeDtypeStruct((B, Sq_p, D), ACT_DTYPE),
        grid=grid,
        in_specs=in_specs,
        out_specs=pl.BlockSpec((1, tq, bw), lambda b, hg, qi, ki: (b, qi, hg)),
        scratch_shapes=[
            pltpu.VMEM((tq, hc), jnp.float32),   # running max (per head)
            pltpu.VMEM((tq, hc), jnp.float32),   # running denom (per head)
            pltpu.VMEM((tq, bw), jnp.float32),   # output accumulator
        ],
        compiler_params=pltpu.CompilerParams(
            dimension_semantics=("parallel", "parallel", "parallel", "arbitrary"),
            vmem_limit_bytes=_vmem_limit(blocks, extra),
        ),
        cost_estimate=cost,
    )(*args)


# ----------------------------------------------------------------------------
# Module wrapper (mirrors the PyTorch MultiHeadedAttention, eval mode)
# ----------------------------------------------------------------------------
class MultiHeadedAttentionPallas:
    def __init__(self, h, d_model, key, dropout=0.1):
        assert d_model % h == 0
        self.h = h
        self.d_k = d_model // h
        self.d_model = d_model
        del dropout  # identity in eval mode

        # 4x nn.Linear(d_model, d_model), PyTorch-style uniform init, stored
        # pre-transposed as (Din, Dout) so kernels never transpose weights.
        bound = 1.0 / math.sqrt(d_model)
        keys = jax.random.split(key, 8)
        self.w_t, self.b = [], []
        for i in range(4):
            self.w_t.append(jax.random.uniform(keys[2 * i], (d_model, d_model),
                                               jnp.float32, -bound, bound))
            self.b.append(jax.random.uniform(keys[2 * i + 1], (d_model,),
                                             jnp.float32, -bound, bound))

        # Kernel-side copies: bf16 weights for the MXU, with 1/sqrt(d_k)
        # folded into the Q projection (zero runtime cost).
        scale = 1.0 / math.sqrt(self.d_k)
        self.wq = (self.w_t[0] * scale).astype(MATMUL_DTYPE)
        self.bq = self.b[0] * scale
        self.wk = self.w_t[1].astype(MATMUL_DTYPE)
        self.bk = self.b[1]
        self.wv = self.w_t[2].astype(MATMUL_DTYPE)
        self.bv = self.b[2]
        self.wo = self.w_t[3].astype(MATMUL_DTYPE)
        self.bo = self.b[3]

        # p_attn intentionally never materialized (pure HBM traffic in fwd).
        # TODO(synk): optional debug path that recomputes/returns p_attn.
        self.attn = None

    def __call__(self, query, key, value, mask=None):
        B, Sq, D = query.shape
        Sk = key.shape[1]

        # Projections emit bf16 activations in (B, S, H*d_k) head-major layout;
        # the attention BlockSpecs index head groups directly, so there are no
        # XLA transpose passes over the activations around attention.
        q = pallas_linear(query.reshape(B * Sq, D), self.wq, self.bq, ACT_DTYPE)
        k = pallas_linear(key.reshape(B * Sk, D), self.wk, self.bk, ACT_DTYPE)
        v = pallas_linear(value.reshape(B * Sk, D), self.wv, self.bv, ACT_DTYPE)
        q = q.reshape(B, Sq, D)
        k = k.reshape(B, Sk, D)
        v = v.reshape(B, Sk, D)
        # TODO(synk): fused single-pass QKV projection (one read of the input)
        # dropped in favor of the transpose-free layout; re-add with a
        # (B, 3, S, D) out_spec if projection DMA ever dominates.

        x = pallas_flash_attention(q, k, v, self.h, self.d_k, mask)  # (B,Sq_p,D)
        self.attn = None  # not materialized (see TODO at top)

        Sq_p = x.shape[1]
        out = pallas_linear(x.reshape(B * Sq_p, D), self.wo, self.bo,
                            jnp.float32)
        return out.reshape(B, Sq_p, D)[:, :Sq]


# ----------------------------------------------------------------------------
# Pure-JAX fp32 reference (for sanity check)
# ----------------------------------------------------------------------------
def reference_mha(mha, query, key, value, mask=None):
    B, Sq, _ = query.shape

    def lin(i, x):
        return x @ mha.w_t[i] + mha.b[i]

    def split_heads(x):
        return x.reshape(B, -1, mha.h, mha.d_k).transpose(0, 2, 1, 3)

    q = split_heads(lin(0, query))
    k = split_heads(lin(1, key))
    v = split_heads(lin(2, value))
    scores = jnp.einsum("bhqd,bhkd->bhqk", q, k) / math.sqrt(mha.d_k)
    if mask is not None:
        scores = jnp.where(mask[:, None, :, :] == 0, -1e9, scores)
    p = jax.nn.softmax(scores, axis=-1)
    x = jnp.einsum("bhqk,bhkd->bhqd", p, v)
    x = x.transpose(0, 2, 1, 3).reshape(B, Sq, mha.h * mha.d_k)
    return lin(3, x)


# ----------------------------------------------------------------------------
if __name__ == "__main__":
    B, S, d_model, h = 2, 8, 32, 4

    root = jax.random.PRNGKey(0)
    k_params, k_q, k_k, k_v = jax.random.split(root, 4)

    mha = MultiHeadedAttentionPallas(h, d_model, k_params)

    query = jax.random.normal(k_q, (B, S, d_model), jnp.float32)
    key = jax.random.normal(k_k, (B, S, d_model), jnp.float32)
    value = jax.random.normal(k_v, (B, S, d_model), jnp.float32)

    # Tolerance reflects the bf16 matmul/activation path (fp32 accumulation).
    TOL = 5e-2

    # Case 1: distinct q/k/v inputs, no mask.
    out1 = jax.block_until_ready(mha(query, key, value, mask=None))
    ref1 = reference_mha(mha, query, key, value, mask=None)
    assert out1.shape == (B, S, d_model)
    err1 = float(jnp.max(jnp.abs(out1 - ref1)))
    assert err1 < TOL, f"mismatch vs reference (no mask): {err1}"

    # Case 2: self-attention with a causal mask (additive-bias path).
    causal = jnp.broadcast_to(jnp.tril(jnp.ones((S, S), jnp.float32)), (B, S, S))
    out2 = jax.block_until_ready(mha(query, query, query, mask=causal))
    ref2 = reference_mha(mha, query, query, query, mask=causal)
    err2 = float(jnp.max(jnp.abs(out2 - ref2)))
    assert err2 < TOL, f"mismatch vs reference (masked): {err2}"

    print("KERNEL_OK")
</pallas_src>

<mosaic_0001>
module attributes {stable_mosaic.version = 11 : i64} {
  func.func @_linear_kernel(%arg0: i32, %arg1: i32, %arg2: i32, %arg3: memref<16x32xf32, #tpu.memory_space<vmem>>, %arg4: memref<32x32xbf16, #tpu.memory_space<vmem>>, %arg5: memref<1x32xf32, #tpu.memory_space<vmem>>, %arg6: memref<16x32xbf16, #tpu.memory_space<vmem>>, %arg7: memref<16x32xf32, #tpu.memory_space<vmem>>) attributes {dimension_semantics = [#tpu.dimension_semantics<parallel>, #tpu.dimension_semantics<parallel>, #tpu.dimension_semantics<arbitrary>], iteration_bounds = array<i64: 1, 1, 1>, scalar_prefetch = 0 : i64, scratch_operands = 1 : i64, tpu.core_type = #tpu.core_type<tc>, window_params = [{transform_indices = @transform_0, window_bounds = array<i64: 16, 32>}, {transform_indices = @transform_1, window_bounds = array<i64: 32, 32>}, {transform_indices = @transform_2, window_bounds = array<i64: 1, 32>}, {transform_indices = @transform_3, window_bounds = array<i64: 16, 32>}]} {
    %c0_i32 = arith.constant 0 : i32
    %0 = arith.cmpi eq, %arg2, %c0_i32 : i32
    %1 = arith.extui %0 : i1 to i32
    %c0_i32_0 = arith.constant 0 : i32
    %2 = arith.cmpi ne, %1, %c0_i32_0 : i32
    scf.if %2 {
      %cst_10 = arith.constant 0.000000e+00 : f32
      %13 = vector.broadcast %cst_10 : f32 to vector<16x32xf32>
      %c0_11 = arith.constant 0 : index
      %c0_12 = arith.constant 0 : index
      %14 = vector.load %arg7[%c0_11, %c0_12] : memref<16x32xf32, #tpu.memory_space<vmem>>, vector<16x32xf32>
      tpu.vector_store %arg7[%c0_11, %c0_12], %13 {strides = array<i32>} : memref<16x32xf32, #tpu.memory_space<vmem>>, vector<16x32xf32>,
    } else {
    }
    %c0 = arith.constant 0 : index
    %c0_1 = arith.constant 0 : index
    %3 = vector.load %arg7[%c0, %c0_1] : memref<16x32xf32, #tpu.memory_space<vmem>>, vector<16x32xf32>
    %c0_2 = arith.constant 0 : index
    %c0_3 = arith.constant 0 : index
    %4 = vector.load %arg3[%c0_2, %c0_3] : memref<16x32xf32, #tpu.memory_space<vmem>>, vector<16x32xf32>
    %5 = arith.truncf %4 : vector<16x32xf32> to vector<16x32xbf16>
    %c0_4 = arith.constant 0 : index
    %c0_5 = arith.constant 0 : index
    %6 = vector.load %arg4[%c0_4, %c0_5] : memref<32x32xbf16, #tpu.memory_space<vmem>>, vector<32x32xbf16>
    %cst = arith.constant dense<0.000000e+00> : vector<16x32xf32>
    %7 = tpu.matmul %5, %6, %cst {dimension_numbers = #tpu.dot_dimension_numbers<[1], [0], [0], [1], [0, 0, 1, 1], [], []>} : vector<16x32xbf16>, vector<32x32xbf16>, vector<16x32xf32> -> vector<16x32xf32>
    %8 = arith.addf %3, %7 : vector<16x32xf32>
    %c0_6 = arith.constant 0 : index
    %c0_7 = arith.constant 0 : index
    %9 = vector.load %arg7[%c0_6, %c0_7] : memref<16x32xf32, #tpu.memory_space<vmem>>, vector<16x32xf32>
    tpu.vector_store %arg7[%c0_6, %c0_7], %8 {strides = array<i32>} : memref<16x32xf32, #tpu.memory_space<vmem>>, vector<16x32xf32>,
    %c0_i32_8 = arith.constant 0 : i32
    %10 = arith.cmpi eq, %arg2, %c0_i32_8 : i32
    %11 = arith.extui %10 : i1 to i32
    %c0_i32_9 = arith.constant 0 : i32
    %12 = arith.cmpi ne, %11, %c0_i32_9 : i32
    scf.if %12 {
      %c0_10 = arith.constant 0 : index
      %c0_11 = arith.constant 0 : index
      %13 = vector.load %arg7[%c0_10, %c0_11] : memref<16x32xf32, #tpu.memory_space<vmem>>, vector<16x32xf32>
      %c0_12 = arith.constant 0 : index
      %c0_13 = arith.constant 0 : index
      %14 = vector.load %arg5[%c0_12, %c0_13] : memref<1x32xf32, #tpu.memory_space<vmem>>, vector<1x32xf32>
      %15 = vector.broadcast %14 : vector<1x32xf32> to vector<16x32xf32>
      %16 = arith.addf %13, %15 : vector<16x32xf32>
      %17 = arith.truncf %16 : vector<16x32xf32> to vector<16x32xbf16>
      %c0_14 = arith.constant 0 : index
      %c0_15 = arith.constant 0 : index
      %18 = vector.load %arg6[%c0_14, %c0_15] : memref<16x32xbf16, #tpu.memory_space<vmem>>, vector<16x32xbf16>
      tpu.vector_store %arg6[%c0_14, %c0_15], %17 {strides = array<i32>} : memref<16x32xbf16, #tpu.memory_space<vmem>>, vector<16x32xbf16>,
    } else {
    }
    return
  }
  func.func @transform_0(%arg0: i32, %arg1: i32, %arg2: i32) -> (i32, i32) {
    %c0_i32 = arith.constant 0 : i32
    return %arg0, %arg2 : i32, i32
  }
  func.func @transform_1(%arg0: i32, %arg1: i32, %arg2: i32) -> (i32, i32) {
    %c0_i32 = arith.constant 0 : i32
    return %arg2, %arg1 : i32, i32
  }
  func.func @transform_2(%arg0: i32, %arg1: i32, %arg2: i32) -> (i32, i32) {
    %c0_i32 = arith.constant 0 : i32
    %c0_i32_0 = arith.constant 0 : i32
    return %c0_i32, %arg1 : i32, i32
  }
  func.func @transform_3(%arg0: i32, %arg1: i32, %arg2: i32) -> (i32, i32) {
    %c0_i32 = arith.constant 0 : i32
    return %arg0, %arg1 : i32, i32
  }
}

</mosaic_0001>

<bundles_post_ra>
// kernel: tpu_custom_call.1
= control target key start
LH: loop header
LB: loop body
LE: loop exit
PB: predicated region body
PF: predicated region fallthrough
CT: control target
= control target key end

     0   :  { %8 = vsyncpa [#allocation4], 0  ;;  %s283_s0 = inlined_call_operand.hbm [shape: f32[16,32], index: 0, kind: input, shape index: {}]   ;;  %s284_s1 = inlined_call_operand.hbm [shape: bf16[32,32], index: 1, kind: input, shape index: {}]   ;;  %s285_s2 = inlined_call_operand.vmem [shape: f32[1,32], index: 2, kind: input, shape index: {}]   ;;  %s286_s3 = inlined_call_operand.hbm [shape: bf16[16,32], index: 3, kind: output, shape index: {}]  }
   0x1   :  { %9 = vsyncpa [#allocation7], 0 }
   0x2   :  { %10 = vsyncpa [#allocation5], 0  ;;  %s15_s14 = sshll.u32 %s283_s0, 4  ;;  %s232_s15 = smov [#allocation3]   ;;  %s16_s14 = int_to_ptr.hbm [resolvable:$true] %s15_s14 }
   0x3   :  { %s17_s16 = sshll.u32 %s232_s15, 4  ;;  %s28_s19 = sshll.u32 %s284_s1, 4  ;;  %s18_s16 = int_to_ptr.vmem [resolvable:$true] %s17_s16  ;;  %s29_s19 = int_to_ptr.hbm [resolvable:$true] %s28_s19 }
   0x4   :  { %s233_s20 = smov 128   ;;  %s234_s21 = smov 8  }
   0x5   :  { %23 = dma.hbm_to_vmem [thread:$0]  %s16_s14, 256, %s18_s16, [#allocation4], %s233_s20, %s233_s20, %s234_s21  }
   0x6   :  { %s235_s22 = smov [#allocation6]   ;;  %s236_s24 = smov 64  }
   0x7   :  { %s30_s23 = sshll.u32 %s235_s22, 4  ;;  %s237_s25 = smov 4   ;;  %s31_s23 = int_to_ptr.vmem [resolvable:$true] %s30_s23 }
   0x8   :  { %36 = dma.hbm_to_vmem [thread:$0]  %s29_s19, 256, %s31_s23, [#allocation7], %s236_s24, %s236_s24, %s237_s25  }
   0x9   :  { %226 = dma.done.wait [#allocation4], 256  }
   0xa   :  { %227 = vsyncadd [#allocation4], 4294967040 }
   0xb   :  { %228 = dma.done.wait [#allocation7], 256  }
   0xc   :  { %229 = vsyncadd [#allocation7], 4294967040  ;;  %vm52_vm0 = vcmask 261120   ;;  %v238_v0 = vmov 0.0   ;;  %v144_v1 = vld [vmem:[#allocation6 + $0x8] sm:$0xff]  ;;  %v143_v2 = vld [vmem:[#allocation6] sm:$0xff] }
   0xd   :  { %53 = vst.msk [vmem:[#allocation2] sm:$0xff] %vm52_vm0, %v238_v0  ;;  %86 = vmatpush.bf16.msra.mxu0 %v144_v1  ;;  %v57_v3 = vld [vmem:[#allocation3] sm:$0xff]  ;;  %v58_v4 = vld [vmem:[#allocation3 + $0x8] sm:$0xff]  ;;  %v153_v10 = vld [vmem:[%s285_s2] ss:$0 sm:$0xff]  ;;  %vm111_vm1 = vcmask 257024  }
   0xe   :  { %54 = vst.msk [vmem:[#allocation2 + $0x8] sm:$0xff] %vm52_vm0, %v238_v0  ;;  %v59_v5 = vpack.c.bf16 %v58_v4, %v57_v3  ;;  %s239_s26 = smov [#allocation8]   ;;  %s120_s30 = sshll.u32 %s286_s3, 4  ;;  %s121_s30 = int_to_ptr.hbm [resolvable:$true] %s120_s30 }
   0xf   :  { %s118_s27 = sshll.u32 %s239_s26, 4  ;;  %s119_s27 = int_to_ptr.vmem [resolvable:$true] %s118_s27 }
  0x11   :  { %87 = vmatpush.bf16.msra.mxu0 %v143_v2 }
  0x14   :  { %142 = vmatmul.msk.bf16.vlgmr.msra.gmra.mxu0 %vm52_vm0, %v59_v5  ;;  %v55_v6 = vld [vmem:[#allocation2] sm:$0xff] }
  0x15   :  { %v56_v9 = vld [vmem:[#allocation2 + $0x8] sm:$0xff] }
  0x91   :  { %v89_v7 = vpop.f32.mrf.mxu0 }
  0x92   :  { %v94_v8 = vadd.f32 %v89_v7, %v55_v6 }
  0x94   :  { %96 = vst.msk [vmem:[#allocation2] sm:$0xff] %vm52_vm0, %v94_v8 }
  0x99   :  { %v91_v11 = vpop.f32.mrf.mxu0 }
  0x9a   :  { %v95_v12 = vadd.f32 %v91_v11, %v56_v9 }
  0x9b   :  { %v101_v13 = vld [vmem:[#allocation2] sm:$0xff] }
  0x9c   :  { %97 = vst.msk [vmem:[#allocation2 + $0x8] sm:$0xff] %vm52_vm0, %v95_v12  ;;  %v107_v14 = vadd.f32 %v153_v10, %v101_v13 }
  0x9e   :  { %v109_v15 = vpack.c.bf16 %v107_v14, %v107_v14 }
  0xa0   :  { %112 = vst.msk [vmem:[#allocation8] sm:$0xf] %vm111_vm1, %v109_v15 }
  0xa3   :  { %v102_v16 = vld [vmem:[#allocation2 + $0x8] sm:$0xff] }
  0xa4   :  { %v108_v17 = vadd.f32 %v153_v10, %v102_v16 }
  0xa6   :  { %v110_v18 = vpack.c.bf16 %v108_v17, %v108_v17 }
  0xa8   :  { %113 = vst.msk [vmem:[#allocation8 + $0x4] sm:$0xf] %vm111_vm1, %v110_v18 }
  0xa9   :  { %126 = dma.vmem_to_hbm [thread:$0]  %s119_s27, 128, %s121_s30, [#allocation5], %s236_s24, %s236_s24, %s237_s25  }
  0xaa   :  { %230 = dma.done.wait [#allocation5], 128  }
  0xab   :  { %231 = vsyncadd [#allocation5], 4294967168 }
  0xac   :  { %131 = vsyncpa [#allocation4], 1 }
  0xad   :  { %132 = vsyncpa [#allocation7], 1 }
  0xae   :  { %133 = vsyncpa [#allocation5], 1 }

</bundles_post_ra>
